<compile_context>
chip_gen: v6e
topology: v6e:2x2x1
jax: 0.10.0
libtpu: 0.0.40
codegen_flags: <defaults>
</compile_context>

<pallas_src>
import jax
import jax.numpy as jnp
from jax.experimental import pallas as pl
from jax.experimental.pallas import tpu as pltpu

EPS = 1e-5  # PyTorch BatchNorm2d default eps


# ------------------------------ kernel factory ------------------------------ #
def _make_kernel(N, H, W, C, mxu_dtype):
    NH = N * H
    WC = W * C
    inv_m = 1.0 / float(N * H * W)

    def lane_group_allsum(row):
        # row: (1, W*C).  Returns (1, W*C) where every lane holds the sum over
        # the W width-positions of its channel (rotate-add tree on the XLU).
        # Requires W to be a power of two (asserted in the wrapper).
        s = row
        k = C
        while k < WC:
            s = s + pltpu.roll(s, shift=k, axis=1)
            k *= 2
        return s

    def conv3x3_band(a2d, wb_ref):
        # a2d: (NH, WC) f32 activations, lanes = (w, c) with c fastest.
        # wb_ref: (3, WC, WC) block-banded weights, one slab per ky tap; the
        # band already encodes the 3 kx taps and the width zero-padding.
        acc = jnp.zeros((NH, WC), jnp.float32)
        h_idx = jax.lax.broadcasted_iota(jnp.int32, (NH, 1), 0) % H
        for dy in range(3):                 # input row = h + dy - 1
            shift = (1 - dy) % NH
            shifted = a2d if shift == 0 else pltpu.roll(a2d, shift=shift, axis=0)
            if dy == 0:                     # needs row h-1 -> mask h == 0
                shifted = jnp.where(h_idx >= 1, shifted, 0.0)
            elif dy == 2:                   # needs row h+1 -> mask h == H-1
                shifted = jnp.where(h_idx <= H - 2, shifted, 0.0)
            acc = acc + jnp.dot(shifted.astype(mxu_dtype), wb_ref[dy],
                                preferred_element_type=jnp.float32)
        return acc

    def batchnorm(acc, g_row, b_row):
        # Training-mode BN (biased batch variance), single sweep for stats.
        s1 = lane_group_allsum(jnp.sum(acc, axis=0, keepdims=True))
        s2 = lane_group_allsum(jnp.sum(acc * acc, axis=0, keepdims=True))
        mean = s1 * inv_m
        var = s2 * inv_m - mean * mean
        scale = g_row * jax.lax.rsqrt(var + EPS)
        shift = b_row - mean * scale
        return acc * scale + shift

    def kernel(x_ref, wb1_ref, wb2_ref, g1_ref, b1_ref, g2_ref, b2_ref, out_ref):
        x = x_ref[...]                                        # (NH, WC) f32
        h1 = jnp.maximum(
            batchnorm(conv3x3_band(x, wb1_ref), g1_ref[...], b1_ref[...]), 0.0)
        y2 = batchnorm(conv3x3_band(h1, wb2_ref), g2_ref[...], b2_ref[...])
        out_ref[...] = jnp.maximum(y2 + x, 0.0)               # residual from VMEM

    return kernel


# --------------------------------- wrapper ---------------------------------- #
def _band_weights(w_hwio, W):
    """(3,3,Cin,Cout) HWIO -> (3, W*Cin, W*Cout) block-banded slabs (per ky).

    band[dy][(w,ci),(w',co)] = w[dy, w'-w+1, ci, co] for |w'-w| <= 1, else 0.
    This folds the 3 kx taps and the width zero-padding into a single matmul
    with K = W*Cin (lane-dense contraction).
    """
    _, _, cin, cout = w_hwio.shape
    slabs = []
    for dy in range(3):
        b = jnp.zeros((W, cin, W, cout), jnp.float32)
        for dx in range(3):
            e = jnp.eye(W, W, 1 - dx, dtype=jnp.float32)  # e[w,w']=1 iff w==w'+dx-1
            b = b + e[:, None, :, None] * w_hwio[dy, dx][None, :, None, :]
        slabs.append(b.reshape(W * cin, W * cout))
    return jnp.stack(slabs, axis=0)


def basic_block_forward(x_nchw, params, *, mxu_dtype=jnp.float32):
    """BasicBlock forward.  x_nchw: (N, C, H, W) f32, returns (N, C, H, W)."""
    w1, g1, b1, w2, g2, b2 = params              # w*: (3, 3, Cin, Cout) HWIO
    N, C, H, W = x_nchw.shape
    planes = w1.shape[-1]
    assert w1.shape[2] == C == planes, "downsample is None => in_planes == planes"
    assert W & (W - 1) == 0, "rotate-add channel reduction assumes power-of-two W"
    NH, WC = N * H, W * C

    # Layout glue only: NCHW -> lane-dense (N*H, W*C), channels fastest.
    x2d = jnp.transpose(x_nchw, (0, 2, 3, 1)).astype(jnp.float32).reshape(NH, WC)
    wb1 = _band_weights(w1.astype(jnp.float32), W).astype(mxu_dtype)
    wb2 = _band_weights(w2.astype(jnp.float32), W).astype(mxu_dtype)
    g1r = jnp.tile(g1.astype(jnp.float32), W).reshape(1, WC)
    b1r = jnp.tile(b1.astype(jnp.float32), W).reshape(1, WC)
    g2r = jnp.tile(g2.astype(jnp.float32), W).reshape(1, WC)
    b2r = jnp.tile(b2.astype(jnp.float32), W).reshape(1, WC)

    vmem = pl.BlockSpec(memory_space=pltpu.MemorySpace.VMEM)
    wb_bytes = 2 * 3 * WC * WC * jnp.dtype(mxu_dtype).itemsize
    cost = pl.CostEstimate(
        flops=2 * 3 * 2 * NH * WC * WC,          # 2 convs x 3 ky taps, K=WC
        transcendentals=2 * WC,                  # rsqrt per BN lane
        bytes_accessed=2 * NH * WC * 4 + wb_bytes + 4 * WC * 4,
    )

    out2d = pl.pallas_call(
        _make_kernel(N, H, W, C, mxu_dtype),
        out_shape=jax.ShapeDtypeStruct((NH, WC), jnp.float32),
        in_specs=[vmem] * 7,
        out_specs=vmem,
        compiler_params=pltpu.CompilerParams(vmem_limit_bytes=32 * 1024 * 1024),
        cost_estimate=cost,
    )(x2d, wb1, wb2, g1r, b1r, g2r, b2r)

    return jnp.transpose(out2d.reshape(N, H, W, C), (0, 3, 1, 2))


# ----------------------------- pure-JAX reference ---------------------------- #
def ref_forward(x_nchw, params):
    w1, g1, b1, w2, g2, b2 = params
    x = jnp.transpose(x_nchw, (0, 2, 3, 1)).astype(jnp.float32)

    def conv(inp, w):
        return jax.lax.conv_general_dilated(
            inp, w, window_strides=(1, 1), padding=((1, 1), (1, 1)),
            dimension_numbers=("NHWC", "HWIO", "NHWC"))

    def bn(y, g, b):
        mean = jnp.mean(y, axis=(0, 1, 2), keepdims=True)
        var = jnp.mean((y - mean) ** 2, axis=(0, 1, 2), keepdims=True)
        return (y - mean) / jnp.sqrt(var + EPS) * g + b

    out = jax.nn.relu(bn(conv(x, w1), g1, b1))
    out = jax.nn.relu(bn(conv(out, w2), g2, b2) + x)
    return jnp.transpose(out, (0, 3, 1, 2))


# ----------------------------------- main ------------------------------------ #
if __name__ == "__main__":
    key = jax.random.PRNGKey(0)
    # BasicBlock(in_planes=8, planes=8): W * C = 16 * 8 = 128 -> full lane width.
    N, planes, H, W = 2, 8, 16, 16
    kx, kw1, kw2 = jax.random.split(key, 3)

    x = jax.random.normal(kx, (N, planes, H, W), dtype=jnp.float32)
    w1 = 0.1 * jax.random.normal(kw1, (3, 3, planes, planes), dtype=jnp.float32)
    w2 = 0.1 * jax.random.normal(kw2, (3, 3, planes, planes), dtype=jnp.float32)
    g1 = jnp.ones((planes,), jnp.float32)
    b1 = jnp.zeros((planes,), jnp.float32)
    g2 = jnp.ones((planes,), jnp.float32)
    b2 = jnp.zeros((planes,), jnp.float32)
    params = (w1, g1, b1, w2, g2, b2)

    ref = ref_forward(x, params)

    # f32 MXU operands: exact-parity check against the f32 reference.
    out_f32 = jax.block_until_ready(basic_block_forward(x, params))
    assert out_f32.shape == x.shape, (out_f32.shape, x.shape)
    err = float(jnp.max(jnp.abs(out_f32 - ref)))
    assert err < 2e-3, f"f32 kernel mismatch vs reference: max abs err = {err}"

    # bf16 MXU operands (f32 accumulation / BN / residual): looser tolerance.
    out_bf16 = jax.block_until_ready(
        basic_block_forward(x, params, mxu_dtype=jnp.bfloat16))
    err_bf = float(jnp.max(jnp.abs(out_bf16 - ref)))
    assert err_bf < 1e-1, f"bf16-MXU kernel mismatch: max abs err = {err_bf}"

    print("KERNEL_OK")
</pallas_src>

<mosaic_0001>
module attributes {stable_mosaic.version = 11 : i64} {
  func.func @kernel(%arg0: memref<32x128xf32, #tpu.memory_space<vmem>>, %arg1: memref<3x128x128xf32, #tpu.memory_space<vmem>>, %arg2: memref<3x128x128xf32, #tpu.memory_space<vmem>>, %arg3: memref<1x128xf32, #tpu.memory_space<vmem>>, %arg4: memref<1x128xf32, #tpu.memory_space<vmem>>, %arg5: memref<1x128xf32, #tpu.memory_space<vmem>>, %arg6: memref<1x128xf32, #tpu.memory_space<vmem>>, %arg7: memref<32x128xf32, #tpu.memory_space<vmem>>) attributes {dimension_semantics = [], scalar_prefetch = 0 : i64, scratch_operands = 0 : i64, tpu.core_type = #tpu.core_type<tc>} {
    %c0 = arith.constant 0 : index
    %c0_0 = arith.constant 0 : index
    %0 = vector.load %arg0[%c0, %c0_0] : memref<32x128xf32, #tpu.memory_space<vmem>>, vector<32x128xf32>
    %cst = arith.constant 0.000000e+00 : f32
    %1 = vector.broadcast %cst : f32 to vector<32x128xf32>
    %2 = tpu.iota {dimensions = array<i32: 0>} : vector<32x1xi32>
    %c16_i32 = arith.constant 16 : i32
    %c0_i32 = arith.constant 0 : i32
    %3 = arith.cmpi eq, %c16_i32, %c0_i32 : i32
    %c1_i32 = arith.constant 1 : i32
    %4 = arith.select %3, %c1_i32, %c16_i32 : i32
    %5 = vector.broadcast %4 : i32 to vector<32x1xi32>
    %6 = arith.remsi %2, %5 : vector<32x1xi32>
    %c0_i32_1 = arith.constant 0 : i32
    %7 = vector.broadcast %c0_i32_1 : i32 to vector<32x1xi32>
    %8 = arith.cmpi ne, %6, %7 : vector<32x1xi32>
    %c0_i32_2 = arith.constant 0 : i32
    %9 = vector.broadcast %c0_i32_2 : i32 to vector<32x1xi32>
    %10 = arith.cmpi slt, %6, %9 : vector<32x1xi32>
    %c0_i32_3 = arith.constant 0 : i32
    %11 = arith.cmpi slt, %4, %c0_i32_3 : i32
    %12 = vector.broadcast %11 : i1 to vector<32x1xi1>
    %13 = vector.broadcast %12 : vector<32x1xi1> to vector<32x1xi1>
    %14 = arith.xori %10, %13 : vector<32x1xi1>
    %15 = arith.andi %14, %8 : vector<32x1xi1>
    %16 = vector.broadcast %4 : i32 to vector<32x1xi32>
    %17 = arith.addi %6, %16 : vector<32x1xi32>
    %18 = arith.select %15, %17, %6 : vector<32x1xi1>, vector<32x1xi32>
    %c1_i32_4 = arith.constant 1 : i32
    %19 = tpu.dynamic_rotate %0 by %c1_i32_4 dim 0 : vector<32x128xf32>, i32 -> vector<32x128xf32>
    %c1_i32_5 = arith.constant 1 : i32
    %20 = vector.broadcast %c1_i32_5 : i32 to vector<32x1xi32>
    %21 = arith.cmpi sge, %18, %20 : vector<32x1xi32>
    %cst_6 = arith.constant 0.000000e+00 : f32
    %22 = vector.shape_cast %21 : vector<32x1xi1> to vector<32x1xi1>
    %23 = vector.broadcast %22 : vector<32x1xi1> to vector<32x128xi1>
    %24 = vector.broadcast %cst_6 : f32 to vector<32x128xf32>
    %25 = arith.select %23, %19, %24 : vector<32x128xi1>, vector<32x128xf32>
    %c0_7 = arith.constant 0 : index
    %c0_8 = arith.constant 0 : index
    %c0_9 = arith.constant 0 : index
    %26 = vector.load %arg1[%c0_7, %c0_8, %c0_9] : memref<3x128x128xf32, #tpu.memory_space<vmem>>, vector<1x128x128xf32>
    %27 = vector.shape_cast %26 : vector<1x128x128xf32> to vector<128x128xf32>
    %cst_10 = arith.constant dense<0.000000e+00> : vector<32x128xf32>
    %28 = tpu.matmul %25, %27, %cst_10 {dimension_numbers = #tpu.dot_dimension_numbers<[1], [0], [0], [1], [0, 0, 1, 1], [], []>} : vector<32x128xf32>, vector<128x128xf32>, vector<32x128xf32> -> vector<32x128xf32>
    %29 = arith.addf %1, %28 : vector<32x128xf32>
    %c1 = arith.constant 1 : index
    %c0_11 = arith.constant 0 : index
    %c0_12 = arith.constant 0 : index
    %30 = vector.load %arg1[%c1, %c0_11, %c0_12] : memref<3x128x128xf32, #tpu.memory_space<vmem>>, vector<1x128x128xf32>
    %31 = vector.shape_cast %30 : vector<1x128x128xf32> to vector<128x128xf32>
    %cst_13 = arith.constant dense<0.000000e+00> : vector<32x128xf32>
    %32 = tpu.matmul %0, %31, %cst_13 {dimension_numbers = #tpu.dot_dimension_numbers<[1], [0], [0], [1], [0, 0, 1, 1], [], []>} : vector<32x128xf32>, vector<128x128xf32>, vector<32x128xf32> -> vector<32x128xf32>
    %33 = arith.addf %29, %32 : vector<32x128xf32>
    %c31_i32 = arith.constant 31 : i32
    %34 = tpu.dynamic_rotate %0 by %c31_i32 dim 0 : vector<32x128xf32>, i32 -> vector<32x128xf32>
    %c14_i32 = arith.constant 14 : i32
    %35 = vector.broadcast %c14_i32 : i32 to vector<32x1xi32>
    %36 = arith.cmpi sle, %18, %35 : vector<32x1xi32>
    %cst_14 = arith.constant 0.000000e+00 : f32
    %37 = vector.shape_cast %36 : vector<32x1xi1> to vector<32x1xi1>
    %38 = vector.broadcast %37 : vector<32x1xi1> to vector<32x128xi1>
    %39 = vector.broadcast %cst_14 : f32 to vector<32x128xf32>
    %40 = arith.select %38, %34, %39 : vector<32x128xi1>, vector<32x128xf32>
    %c2 = arith.constant 2 : index
    %c0_15 = arith.constant 0 : index
    %c0_16 = arith.constant 0 : index
    %41 = vector.load %arg1[%c2, %c0_15, %c0_16] : memref<3x128x128xf32, #tpu.memory_space<vmem>>, vector<1x128x128xf32>
    %42 = vector.shape_cast %41 : vector<1x128x128xf32> to vector<128x128xf32>
    %cst_17 = arith.constant dense<0.000000e+00> : vector<32x128xf32>
    %43 = tpu.matmul %40, %42, %cst_17 {dimension_numbers = #tpu.dot_dimension_numbers<[1], [0], [0], [1], [0, 0, 1, 1], [], []>} : vector<32x128xf32>, vector<128x128xf32>, vector<32x128xf32> -> vector<32x128xf32>
    %44 = arith.addf %33, %43 : vector<32x128xf32>
    %c0_18 = arith.constant 0 : index
    %c0_19 = arith.constant 0 : index
    %45 = vector.load %arg3[%c0_18, %c0_19] : memref<1x128xf32, #tpu.memory_space<vmem>>, vector<1x128xf32>
    %c0_20 = arith.constant 0 : index
    %c0_21 = arith.constant 0 : index
    %46 = vector.load %arg4[%c0_20, %c0_21] : memref<1x128xf32, #tpu.memory_space<vmem>>, vector<1x128xf32>
    %cst_22 = arith.constant dense<0.000000e+00> : vector<128xf32>
    %47 = vector.multi_reduction <add>, %44, %cst_22 [0] : vector<32x128xf32> to vector<128xf32>
    %48 = vector.shape_cast %47 : vector<128xf32> to vector<1x128xf32>
    %c8_i32 = arith.constant 8 : i32
    %49 = tpu.dynamic_rotate %48 by %c8_i32 dim 1 : vector<1x128xf32>, i32 -> vector<1x128xf32>
    %50 = arith.addf %48, %49 : vector<1x128xf32>
    %c16_i32_23 = arith.constant 16 : i32
    %51 = tpu.dynamic_rotate %50 by %c16_i32_23 dim 1 : vector<1x128xf32>, i32 -> vector<1x128xf32>
    %52 = arith.addf %50, %51 : vector<1x128xf32>
    %c32_i32 = arith.constant 32 : i32
    %53 = tpu.dynamic_rotate %52 by %c32_i32 dim 1 : vector<1x128xf32>, i32 -> vector<1x128xf32>
    %54 = arith.addf %52, %53 : vector<1x128xf32>
    %c64_i32 = arith.constant 64 : i32
    %55 = tpu.dynamic_rotate %54 by %c64_i32 dim 1 : vector<1x128xf32>, i32 -> vector<1x128xf32>
    %56 = arith.addf %54, %55 : vector<1x128xf32>
    %57 = arith.mulf %44, %44 : vector<32x128xf32>
    %cst_24 = arith.constant dense<0.000000e+00> : vector<128xf32>
    %58 = vector.multi_reduction <add>, %57, %cst_24 [0] : vector<32x128xf32> to vector<128xf32>
    %59 = vector.shape_cast %58 : vector<128xf32> to vector<1x128xf32>
    %c8_i32_25 = arith.constant 8 : i32
    %60 = tpu.dynamic_rotate %59 by %c8_i32_25 dim 1 : vector<1x128xf32>, i32 -> vector<1x128xf32>
    %61 = arith.addf %59, %60 : vector<1x128xf32>
    %c16_i32_26 = arith.constant 16 : i32
    %62 = tpu.dynamic_rotate %61 by %c16_i32_26 dim 1 : vector<1x128xf32>, i32 -> vector<1x128xf32>
    %63 = arith.addf %61, %62 : vector<1x128xf32>
    %c32_i32_27 = arith.constant 32 : i32
    %64 = tpu.dynamic_rotate %63 by %c32_i32_27 dim 1 : vector<1x128xf32>, i32 -> vector<1x128xf32>
    %65 = arith.addf %63, %64 : vector<1x128xf32>
    %c64_i32_28 = arith.constant 64 : i32
    %66 = tpu.dynamic_rotate %65 by %c64_i32_28 dim 1 : vector<1x128xf32>, i32 -> vector<1x128xf32>
    %67 = arith.addf %65, %66 : vector<1x128xf32>
    %cst_29 = arith.constant 0.001953125 : f32
    %68 = vector.broadcast %cst_29 : f32 to vector<1x128xf32>
    %69 = arith.mulf %56, %68 : vector<1x128xf32>
    %cst_30 = arith.constant 0.001953125 : f32
    %70 = vector.broadcast %cst_30 : f32 to vector<1x128xf32>
    %71 = arith.mulf %67, %70 : vector<1x128xf32>
    %72 = arith.mulf %69, %69 : vector<1x128xf32>
    %73 = arith.subf %71, %72 : vector<1x128xf32>
    %cst_31 = arith.constant 9.99999974E-6 : f32
    %74 = vector.broadcast %cst_31 : f32 to vector<1x128xf32>
    %75 = arith.addf %73, %74 : vector<1x128xf32>
    %76 = math.rsqrt %75 : vector<1x128xf32>
    %77 = arith.mulf %45, %76 : vector<1x128xf32>
    %78 = arith.mulf %69, %77 : vector<1x128xf32>
    %79 = arith.subf %46, %78 : vector<1x128xf32>
    %80 = vector.broadcast %77 : vector<1x128xf32> to vector<32x128xf32>
    %81 = arith.mulf %44, %80 : vector<32x128xf32>
    %82 = vector.broadcast %79 : vector<1x128xf32> to vector<32x128xf32>
    %83 = arith.addf %81, %82 : vector<32x128xf32>
    %cst_32 = arith.constant 0.000000e+00 : f32
    %84 = vector.broadcast %cst_32 : f32 to vector<32x128xf32>
    %85 = arith.maximumf %83, %84 : vector<32x128xf32>
    %cst_33 = arith.constant 0.000000e+00 : f32
    %86 = vector.broadcast %cst_33 : f32 to vector<32x128xf32>
    %87 = tpu.iota {dimensions = array<i32: 0>} : vector<32x1xi32>
    %c16_i32_34 = arith.constant 16 : i32
    %c0_i32_35 = arith.constant 0 : i32
    %88 = arith.cmpi eq, %c16_i32_34, %c0_i32_35 : i32
    %c1_i32_36 = arith.constant 1 : i32
    %89 = arith.select %88, %c1_i32_36, %c16_i32_34 : i32
    %90 = vector.broadcast %89 : i32 to vector<32x1xi32>
    %91 = arith.remsi %87, %90 : vector<32x1xi32>
    %c0_i32_37 = arith.constant 0 : i32
    %92 = vector.broadcast %c0_i32_37 : i32 to vector<32x1xi32>
    %93 = arith.cmpi ne, %91, %92 : vector<32x1xi32>
    %c0_i32_38 = arith.constant 0 : i32
    %94 = vector.broadcast %c0_i32_38 : i32 to vector<32x1xi32>
    %95 = arith.cmpi slt, %91, %94 : vector<32x1xi32>
    %c0_i32_39 = arith.constant 0 : i32
    %96 = arith.cmpi slt, %89, %c0_i32_39 : i32
    %97 = vector.broadcast %96 : i1 to vector<32x1xi1>
    %98 = vector.broadcast %97 : vector<32x1xi1> to vector<32x1xi1>
    %99 = arith.xori %95, %98 : vector<32x1xi1>
    %100 = arith.andi %99, %93 : vector<32x1xi1>
    %101 = vector.broadcast %89 : i32 to vector<32x1xi32>
    %102 = arith.addi %91, %101 : vector<32x1xi32>
    %103 = arith.select %100, %102, %91 : vector<32x1xi1>, vector<32x1xi32>
    %c1_i32_40 = arith.constant 1 : i32
    %104 = tpu.dynamic_rotate %85 by %c1_i32_40 dim 0 : vector<32x128xf32>, i32 -> vector<32x128xf32>
    %c1_i32_41 = arith.constant 1 : i32
    %105 = vector.broadcast %c1_i32_41 : i32 to vector<32x1xi32>
    %106 = arith.cmpi sge, %103, %105 : vector<32x1xi32>
    %cst_42 = arith.constant 0.000000e+00 : f32
    %107 = vector.shape_cast %106 : vector<32x1xi1> to vector<32x1xi1>
    %108 = vector.broadcast %107 : vector<32x1xi1> to vector<32x128xi1>
    %109 = vector.broadcast %cst_42 : f32 to vector<32x128xf32>
    %110 = arith.select %108, %104, %109 : vector<32x128xi1>, vector<32x128xf32>
    %c0_43 = arith.constant 0 : index
    %c0_44 = arith.constant 0 : index
    %c0_45 = arith.constant 0 : index
    %111 = vector.load %arg2[%c0_43, %c0_44, %c0_45] : memref<3x128x128xf32, #tpu.memory_space<vmem>>, vector<1x128x128xf32>
    %112 = vector.shape_cast %111 : vector<1x128x128xf32> to vector<128x128xf32>
    %cst_46 = arith.constant dense<0.000000e+00> : vector<32x128xf32>
    %113 = tpu.matmul %110, %112, %cst_46 {dimension_numbers = #tpu.dot_dimension_numbers<[1], [0], [0], [1], [0, 0, 1, 1], [], []>} : vector<32x128xf32>, vector<128x128xf32>, vector<32x128xf32> -> vector<32x128xf32>
    %114 = arith.addf %86, %113 : vector<32x128xf32>
    %c1_47 = arith.constant 1 : index
    %c0_48 = arith.constant 0 : index
    %c0_49 = arith.constant 0 : index
    %115 = vector.load %arg2[%c1_47, %c0_48, %c0_49] : memref<3x128x128xf32, #tpu.memory_space<vmem>>, vector<1x128x128xf32>
    %116 = vector.shape_cast %115 : vector<1x128x128xf32> to vector<128x128xf32>
    %cst_50 = arith.constant dense<0.000000e+00> : vector<32x128xf32>
    %117 = tpu.matmul %85, %116, %cst_50 {dimension_numbers = #tpu.dot_dimension_numbers<[1], [0], [0], [1], [0, 0, 1, 1], [], []>} : vector<32x128xf32>, vector<128x128xf32>, vector<32x128xf32> -> vector<32x128xf32>
    %118 = arith.addf %114, %117 : vector<32x128xf32>
    %c31_i32_51 = arith.constant 31 : i32
    %119 = tpu.dynamic_rotate %85 by %c31_i32_51 dim 0 : vector<32x128xf32>, i32 -> vector<32x128xf32>
    %c14_i32_52 = arith.constant 14 : i32
    %120 = vector.broadcast %c14_i32_52 : i32 to vector<32x1xi32>
    %121 = arith.cmpi sle, %103, %120 : vector<32x1xi32>
    %cst_53 = arith.constant 0.000000e+00 : f32
    %122 = vector.shape_cast %121 : vector<32x1xi1> to vector<32x1xi1>
    %123 = vector.broadcast %122 : vector<32x1xi1> to vector<32x128xi1>
    %124 = vector.broadcast %cst_53 : f32 to vector<32x128xf32>
    %125 = arith.select %123, %119, %124 : vector<32x128xi1>, vector<32x128xf32>
    %c2_54 = arith.constant 2 : index
    %c0_55 = arith.constant 0 : index
    %c0_56 = arith.constant 0 : index
    %126 = vector.load %arg2[%c2_54, %c0_55, %c0_56] : memref<3x128x128xf32, #tpu.memory_space<vmem>>, vector<1x128x128xf32>
    %127 = vector.shape_cast %126 : vector<1x128x128xf32> to vector<128x128xf32>
    %cst_57 = arith.constant dense<0.000000e+00> : vector<32x128xf32>
    %128 = tpu.matmul %125, %127, %cst_57 {dimension_numbers = #tpu.dot_dimension_numbers<[1], [0], [0], [1], [0, 0, 1, 1], [], []>} : vector<32x128xf32>, vector<128x128xf32>, vector<32x128xf32> -> vector<32x128xf32>
    %129 = arith.addf %118, %128 : vector<32x128xf32>
    %c0_58 = arith.constant 0 : index
    %c0_59 = arith.constant 0 : index
    %130 = vector.load %arg5[%c0_58, %c0_59] : memref<1x128xf32, #tpu.memory_space<vmem>>, vector<1x128xf32>
    %c0_60 = arith.constant 0 : index
    %c0_61 = arith.constant 0 : index
    %131 = vector.load %arg6[%c0_60, %c0_61] : memref<1x128xf32, #tpu.memory_space<vmem>>, vector<1x128xf32>
    %cst_62 = arith.constant dense<0.000000e+00> : vector<128xf32>
    %132 = vector.multi_reduction <add>, %129, %cst_62 [0] : vector<32x128xf32> to vector<128xf32>
    %133 = vector.shape_cast %132 : vector<128xf32> to vector<1x128xf32>
    %c8_i32_63 = arith.constant 8 : i32
    %134 = tpu.dynamic_rotate %133 by %c8_i32_63 dim 1 : vector<1x128xf32>, i32 -> vector<1x128xf32>
    %135 = arith.addf %133, %134 : vector<1x128xf32>
    %c16_i32_64 = arith.constant 16 : i32
    %136 = tpu.dynamic_rotate %135 by %c16_i32_64 dim 1 : vector<1x128xf32>, i32 -> vector<1x128xf32>
    %137 = arith.addf %135, %136 : vector<1x128xf32>
    %c32_i32_65 = arith.constant 32 : i32
    %138 = tpu.dynamic_rotate %137 by %c32_i32_65 dim 1 : vector<1x128xf32>, i32 -> vector<1x128xf32>
    %139 = arith.addf %137, %138 : vector<1x128xf32>
    %c64_i32_66 = arith.constant 64 : i32
    %140 = tpu.dynamic_rotate %139 by %c64_i32_66 dim 1 : vector<1x128xf32>, i32 -> vector<1x128xf32>
    %141 = arith.addf %139, %140 : vector<1x128xf32>
    %142 = arith.mulf %129, %129 : vector<32x128xf32>
    %cst_67 = arith.constant dense<0.000000e+00> : vector<128xf32>
    %143 = vector.multi_reduction <add>, %142, %cst_67 [0] : vector<32x128xf32> to vector<128xf32>
    %144 = vector.shape_cast %143 : vector<128xf32> to vector<1x128xf32>
    %c8_i32_68 = arith.constant 8 : i32
    %145 = tpu.dynamic_rotate %144 by %c8_i32_68 dim 1 : vector<1x128xf32>, i32 -> vector<1x128xf32>
    %146 = arith.addf %144, %145 : vector<1x128xf32>
    %c16_i32_69 = arith.constant 16 : i32
    %147 = tpu.dynamic_rotate %146 by %c16_i32_69 dim 1 : vector<1x128xf32>, i32 -> vector<1x128xf32>
    %148 = arith.addf %146, %147 : vector<1x128xf32>
    %c32_i32_70 = arith.constant 32 : i32
    %149 = tpu.dynamic_rotate %148 by %c32_i32_70 dim 1 : vector<1x128xf32>, i32 -> vector<1x128xf32>
    %150 = arith.addf %148, %149 : vector<1x128xf32>
    %c64_i32_71 = arith.constant 64 : i32
    %151 = tpu.dynamic_rotate %150 by %c64_i32_71 dim 1 : vector<1x128xf32>, i32 -> vector<1x128xf32>
    %152 = arith.addf %150, %151 : vector<1x128xf32>
    %cst_72 = arith.constant 0.001953125 : f32
    %153 = vector.broadcast %cst_72 : f32 to vector<1x128xf32>
    %154 = arith.mulf %141, %153 : vector<1x128xf32>
    %cst_73 = arith.constant 0.001953125 : f32
    %155 = vector.broadcast %cst_73 : f32 to vector<1x128xf32>
    %156 = arith.mulf %152, %155 : vector<1x128xf32>
    %157 = arith.mulf %154, %154 : vector<1x128xf32>
    %158 = arith.subf %156, %157 : vector<1x128xf32>
    %cst_74 = arith.constant 9.99999974E-6 : f32
    %159 = vector.broadcast %cst_74 : f32 to vector<1x128xf32>
    %160 = arith.addf %158, %159 : vector<1x128xf32>
    %161 = math.rsqrt %160 : vector<1x128xf32>
    %162 = arith.mulf %130, %161 : vector<1x128xf32>
    %163 = arith.mulf %154, %162 : vector<1x128xf32>
    %164 = arith.subf %131, %163 : vector<1x128xf32>
    %165 = vector.broadcast %162 : vector<1x128xf32> to vector<32x128xf32>
    %166 = arith.mulf %129, %165 : vector<32x128xf32>
    %167 = vector.broadcast %164 : vector<1x128xf32> to vector<32x128xf32>
    %168 = arith.addf %166, %167 : vector<32x128xf32>
    %169 = arith.addf %168, %0 : vector<32x128xf32>
    %cst_75 = arith.constant 0.000000e+00 : f32
    %170 = vector.broadcast %cst_75 : f32 to vector<32x128xf32>
    %171 = arith.maximumf %169, %170 : vector<32x128xf32>
    %c0_76 = arith.constant 0 : index
    %c0_77 = arith.constant 0 : index
    %172 = vector.load %arg7[%c0_76, %c0_77] : memref<32x128xf32, #tpu.memory_space<vmem>>, vector<32x128xf32>
    tpu.vector_store %arg7[%c0_76, %c0_77], %171 {strides = array<i32>} : memref<32x128xf32, #tpu.memory_space<vmem>>, vector<32x128xf32>,
    return
  }
}

</mosaic_0001>

<bundles_post_ra>
// kernel: tpu_custom_call.1
= control target key start
LH: loop header
LB: loop body
LE: loop exit
PB: predicated region body
PF: predicated region fallthrough
CT: control target
= control target key end

     0   :  { %12 = vsyncpa [#allocation3], 0  ;;  %s1732_s0 = inlined_call_operand.hbm [shape: f32[32,128], index: 0, kind: input, shape index: {}]   ;;  %s1733_s1 = inlined_call_operand.hbm [shape: f32[3,128,128], index: 1, kind: input, shape index: {}]   ;;  %s1734_s2 = inlined_call_operand.hbm [shape: f32[3,128,128], index: 2, kind: input, shape index: {}]   ;;  %s1735_s3 = inlined_call_operand.vmem [shape: f32[1,128], index: 3, kind: input, shape index: {}]   ;;  %s1736_s4 = inlined_call_operand.vmem [shape: f32[1,128], index: 4, kind: input, shape index: {}]   ;;  %s1737_s5 = inlined_call_operand.vmem [shape: f32[1,128], index: 5, kind: input, shape index: {}]   ;;  %s1738_s6 = inlined_call_operand.vmem [shape: f32[1,128], index: 6, kind: input, shape index: {}]   ;;  %s1739_s7 = inlined_call_operand.hbm [shape: f32[32,128], index: 7, kind: output, shape index: {}]  }
   0x1   :  { %13 = vsyncpa [#allocation6], 0 }
   0x2   :  { %14 = vsyncpa [#allocation4], 0  ;;  %s1460_s24 = smov [#allocation5]   ;;  %s1461_s26 = smov [#allocation2]  }
   0x3   :  { %s32_s25 = sshll.u32 %s1460_s24, 4  ;;  %s20_s27 = sshll.u32 %s1461_s26, 4  ;;  %s33_s25 = int_to_ptr.vmem [resolvable:$true] %s32_s25  ;;  %s21_s27 = int_to_ptr.vmem [resolvable:$true] %s20_s27 }
   0x4   :  { %s1382_s28 = scalar_lea.vmem %s33_s25, 6144  ;;  %p1387_p1 = scmp.lt.s32.totalorder %s33_s25, %s33_s25 }
   0x5   :  { %p1383_p0 = scmp.ne.s32.totalorder %s33_s25, %s1382_s28  ;;  %p1388_p2 = scmp.lt.s32.totalorder %s1382_s28, %s1382_s28 }
   0x7   :  { %p1389_p3 = por %p1388_p2, %p1387_p1 }
   0x9   :  { %p1390_p4 = pnand %p1389_p3, %p1383_p0 }
   0xb   :  { %1393 = shalt.err (!%p1390_p4)
}
   0xc   :  { %s1462_s29 = smov 128   ;;  %s1463_s30 = smov 8  }
   0xd   :  { %38 = dma.hbm_to_vmem [thread:$0]  %s1733_s1, 6144, %s33_s25, [#allocation6], %s1462_s29, %s1462_s29, %s1463_s30  }
   0xe   :  { %s1402_s10 = scalar_lea.vmem %s21_s27, 512  ;;  %p1407_p6 = scmp.lt.s32.totalorder %s21_s27, %s21_s27 }
   0xf   :  { %p1403_p5 = scmp.ne.s32.totalorder %s21_s27, %s1402_s10  ;;  %p1408_p7 = scmp.lt.s32.totalorder %s1402_s10, %s1402_s10 }
  0x11   :  { %p1409_p8 = por %p1408_p7, %p1407_p6 }
  0x13   :  { %p1410_p9 = pnand %p1409_p8, %p1403_p5 }
  0x15   :  { %1413 = shalt.err (!%p1410_p9)
}
  0x16   :  { %26 = dma.hbm_to_vmem [thread:$0]  %s1732_s0, 512, %s21_s27, [#allocation3], %s1462_s29, %s1462_s29, %s1463_s30  }
  0x17   :  { %s1464_s13 = smov [#allocation7]  }
  0x18   :  { %s44_s14 = sshll.u32 %s1464_s13, 4  ;;  %s45_s14 = int_to_ptr.vmem [resolvable:$true] %s44_s14 }
  0x19   :  { %s1422_s15 = scalar_lea.vmem %s45_s14, 6144  ;;  %p1427_p11 = scmp.lt.s32.totalorder %s45_s14, %s45_s14 }
  0x1a   :  { %p1423_p10 = scmp.ne.s32.totalorder %s45_s14, %s1422_s15  ;;  %p1428_p12 = scmp.lt.s32.totalorder %s1422_s15, %s1422_s15 }
  0x1c   :  { %p1429_p13 = por %p1428_p12, %p1427_p11 }
  0x1e   :  { %p1430_p0 = pnand %p1429_p13, %p1423_p10 }
  0x20   :  { %1433 = shalt.err (!%p1430_p0)
}
  0x21   :  { %50 = dma.hbm_to_vmem [thread:$0]  %s1734_s2, 6144, %s45_s14, [#allocation6], %s1462_s29, %s1462_s29, %s1463_s30  }
  0x22   :  { %1454 = dma.done.wait [#allocation3], 512  }
  0x23   :  { %1455 = vsyncadd [#allocation3], 4294966784 }
  0x24   :  { %1456 = dma.done.wait [#allocation6], 12288  }
  0x25   :  { %1457 = vsyncadd [#allocation6], 4294955008  ;;  %v182_v0 = vld [vmem:[#allocation5 + $0xf8] sm:$0xff]  ;;  %v181_v2 = vld [vmem:[#allocation5 + $0xf0] sm:$0xff]  ;;  %v72_v22 = vlaneseq  ;;  %s1465_s0 = smov 16   ;;  %s1466_s2 = smov 32  }
  0x26   :  { %v165_v1 = vld [vmem:[#allocation5 + $0x78] sm:$0xff]  ;;  %1133 = vmatprep.subr.mxu0 %v182_v0  ;;  %v164_v3 = vld [vmem:[#allocation5 + $0x70] sm:$0xff]  ;;  %v180_v4 = vld [vmem:[#allocation5 + $0xe8] sm:$0xff]  ;;  %s1467_s17 = smov 64  }
  0x27   :  { %1171 = vmatprep.subr.mxu1 %v165_v1  ;;  %1134 = vmatpush3.msra.mxu0 %v182_v0  ;;  %v163_v5 = vld [vmem:[#allocation5 + $0x68] sm:$0xff]  ;;  %v179_v6 = vld [vmem:[#allocation5 + $0xe0] sm:$0xff]  ;;  %v178_v8 = vld [vmem:[#allocation5 + $0xd8] sm:$0xff]  ;;  %v1527_v27 = vshrl.u32 %v72_v22, 7 }
  0x28   :  { %1172 = vmatpush3.msra.mxu1 %v165_v1  ;;  %1135 = vmatprep.subr.mxu0 %v181_v2  ;;  %v162_v7 = vld [vmem:[#allocation5 + $0x60] sm:$0xff]  ;;  %v161_v9 = vld [vmem:[#allocation5 + $0x58] sm:$0xff]  ;;  %v177_v10 = vld [vmem:[#allocation5 + $0xd0] sm:$0xff] }
  0x29   :  { %1173 = vmatprep.subr.mxu1 %v164_v3  ;;  %1136 = vmatpush3.msra.mxu0 %v181_v2  ;;  %v160_v11 = vld [vmem:[#allocation5 + $0x50] sm:$0xff]  ;;  %v176_v12 = vld [vmem:[#allocation5 + $0xc8] sm:$0xff]  ;;  %v175_v14 = vld [vmem:[#allocation5 + $0xc0] sm:$0xff]  ;;  %v75_v33 = vadd.s32 16, %v1527_v27  ;;  %v81_v36 = vand.u32 15, %v1527_v27  ;;  %vm129_vm0 = vcmp.lt.s32.totalorder %v1527_v27, 1 }
  0x2a   :  { %1174 = vmatpush3.msra.mxu1 %v164_v3  ;;  %1137 = vmatprep.subr.mxu0 %v180_v4  ;;  %v159_v13 = vld [vmem:[#allocation5 + $0x48] sm:$0xff]  ;;  %v158_v15 = vld [vmem:[#allocation5 + $0x40] sm:$0xff]  ;;  %v174_v16 = vld [vmem:[#allocation5 + $0xb8] sm:$0xff]  ;;  %vm357_vm3 = vcmp.lt.s32.totalorder %v1527_v27, 7  ;;  %v74_v3 = vadd.s32 8, %v1527_v27 }
  0x2b   :  { %1175 = vmatprep.subr.mxu1 %v163_v5  ;;  %1138 = vmatpush3.msra.mxu0 %v180_v4  ;;  %v157_v17 = vld [vmem:[#allocation5 + $0x38] sm:$0xff]  ;;  %v173_v18 = vld [vmem:[#allocation5 + $0xb0] sm:$0xff]  ;;  %v172_v20 = vld [vmem:[#allocation5 + $0xa8] sm:$0xff]  ;;  %v95_v44 = vand.u32 15, %v75_v33  ;;  %vm1546_vm1 = vcmp.ge.s32.totalorder %v81_v36, 1 }
  0x2c   :  { %1176 = vmatpush3.msra.mxu1 %v163_v5  ;;  %1139 = vmatprep.subr.mxu0 %v179_v6  ;;  %v156_v19 = vld [vmem:[#allocation5 + $0x30] sm:$0xff]  ;;  %v155_v21 = vld [vmem:[#allocation5 + $0x28] sm:$0xff]  ;;  %v171_v23 = vld [vmem:[#allocation5 + $0xa0] sm:$0xff] }
  0x2d   :  { %1177 = vmatprep.subr.mxu1 %v162_v7  ;;  %1140 = vmatpush3.msra.mxu0 %v179_v6  ;;  %v154_v24 = vld [vmem:[#allocation5 + $0x20] sm:$0xff]  ;;  %v170_v25 = vld [vmem:[#allocation5 + $0x98] sm:$0xff]  ;;  %v169_v30 = vld [vmem:[#allocation5 + $0x90] sm:$0xff]  ;;  %vm1557_vm2 = vcmp.ge.s32.totalorder %v95_v44, 1 }
  0x2e   :  { %1178 = vmatpush3.msra.mxu1 %v162_v7  ;;  %1141 = vmatprep.subr.mxu0 %v178_v8  ;;  %v153_v26 = vld [vmem:[#allocation5 + $0x18] sm:$0xff]  ;;  %v1529_v28 = vld [vmem:[#allocation2] sm:$0xff]  ;;  %v152_v31 = vld [vmem:[#allocation5 + $0x10] sm:$0xff]  ;;  %v88_v7 = vand.u32 15, %v74_v3 }
  0x2f   :  { %1179 = vmatprep.subr.mxu1 %v161_v9  ;;  %1142 = vmatpush3.msra.mxu0 %v178_v8  ;;  %v1531_v29 = vld [vmem:[#allocation2 + $0x18] sm:$0xff]  ;;  %v1533_v32 = vld [vmem:[#allocation2 + $0x8] sm:$0xff]  ;;  %v125_v37 = vrot.slane %v1529_v28, 7  ;;  %v1539_v39 = vld [vmem:[#allocation2 + $0x10] sm:$0xff]  ;;  %v353_v51 = vrot.slane %v1529_v28, 1  ;;  %v76_v8 = vadd.s32 24, %v1527_v27 }
  0x30   :  { %1180 = vmatpush3.msra.mxu1 %v161_v9  ;;  %1143 = vmatprep.subr.mxu0 %v177_v10  ;;  %v168_v34 = vld [vmem:[#allocation5 + $0x88] sm:$0xff]  ;;  %v128_v38 = vrot.slane %v1531_v29, 7  ;;  %v126_v40 = vrot.slane %v1533_v32, 7  ;;  %v167_v41 = vld [vmem:[#allocation5 + $0x80] sm:$0xff]  ;;  %v127_v43 = vrot.slane %v1539_v39, 7  ;;  %v394_v48 = vld [vmem:[#allocation5 + $0x178] sm:$0xff] }
  0x31   :  { %1181 = vmatprep.subr.mxu1 %v160_v11  ;;  %1144 = vmatpush3.msra.mxu0 %v177_v10  ;;  %v151_v35 = vld [vmem:[#allocation5 + $0x8] sm:$0xff]  ;;  %v150_v42 = vld [vmem:[#allocation5] sm:$0xff]  ;;  %v354_v52 = vrot.slane %v1533_v32, 1  ;;  %v393_v53 = vld [vmem:[#allocation5 + $0x170] sm:$0xff]  ;;  %v355_v5 = vrot.slane %v1539_v39, 1  ;;  %v356_v9 = vrot.slane %v1531_v29, 1 }
  0x32   :  { %1182 = vmatpush3.msra.mxu1 %v160_v11  ;;  %1145 = vmatprep.subr.mxu0 %v176_v12  ;;  %v133_v45 = vsel %vm129_vm0, %v128_v38, %v125_v37  ;;  %v132_v47 = vsel %vm129_vm0, %v125_v37, %v126_v40  ;;  %v131_v49 = vsel %vm129_vm0, %v126_v40, %v127_v43  ;;  %v392_v55 = vld [vmem:[#allocation5 + $0x168] sm:$0xff]  ;;  %v391_v57 = vld [vmem:[#allocation5 + $0x160] sm:$0xff]  ;;  %v390_v58 = vld [vmem:[#allocation5 + $0x158] sm:$0xff]  ;;  %vm1581_vm4 = vcmp.le.s32.totalorder %v88_v7, 14 }
  0x33   :  { %1183 = vmatprep.subr.mxu1 %v159_v13  ;;  %1146 = vmatpush3.msra.mxu0 %v176_v12  ;;  %v130_v54 = vsel %vm129_vm0, %v127_v43, %v128_v38  ;;  %v360_v56 = vsel %vm357_vm3, %v353_v51, %v354_v52  ;;  %v389_v59 = vld [vmem:[#allocation5 + $0x150] sm:$0xff]  ;;  %v388_v60 = vld [vmem:[#allocation5 + $0x148] sm:$0xff]  ;;  %v387_v61 = vld [vmem:[#allocation5 + $0x140] sm:$0xff]  ;;  %v359_v11 = vsel %vm357_vm3, %v354_v52, %v355_v5 }
  0x34   :  { %1184 = vmatpush3.msra.mxu1 %v159_v13  ;;  %1147 = vmatprep.subr.mxu0 %v175_v14  ;;  %v386_v62 = vld [vmem:[#allocation5 + $0x138] sm:$0xff]  ;;  %v385_v63 = vld [vmem:[#allocation5 + $0x130] sm:$0xff]  ;;  %v384_v0 = vld [vmem:[#allocation5 + $0x128] sm:$0xff]  ;;  %v102_v13 = vand.u32 15, %v76_v8 }
  0x35   :  { %1185 = vmatprep.subr.mxu1 %v158_v15  ;;  %1148 = vmatpush3.msra.mxu0 %v175_v14  ;;  %v383_v1 = vld [vmem:[#allocation5 + $0x120] sm:$0xff]  ;;  %v382_v2 = vld [vmem:[#allocation5 + $0x118] sm:$0xff]  ;;  %v381_v4 = vld [vmem:[#allocation5 + $0x110] sm:$0xff]  ;;  %v358_v14 = vsel %vm357_vm3, %v355_v5, %v356_v9 }
  0x36   :  { %1186 = vmatpush3.msra.mxu1 %v158_v15  ;;  %1149 = vmatprep.subr.mxu0 %v174_v16  ;;  %v380_v6 = vld [vmem:[#allocation5 + $0x108] sm:$0xff]  ;;  %v379_v10 = vld [vmem:[#allocation5 + $0x100] sm:$0xff]  ;;  %v361_v15 = vsel %vm357_vm3, %v356_v9, %v353_v51  ;;  %vm1593_vm5 = vcmp.le.s32.totalorder %v102_v13, 14 }
  0x37   :  { %1187 = vmatprep.subr.mxu1 %v157_v17  ;;  %1150 = vmatpush3.msra.mxu0 %v174_v16  ;;  %v607_v13 = vld [vmem:[#allocation7 + $0xe8] sm:$0xff]  ;;  %v801_v50 = vld [vmem:[#allocation7 + $0x140] sm:$0xff] }
  0x38   :  { %1188 = vmatpush3.msra.mxu1 %v157_v17  ;;  %1151 = vmatprep.subr.mxu0 %v173_v18 }
  0x39   :  { %1189 = vmatprep.subr.mxu1 %v156_v19  ;;  %1152 = vmatpush3.msra.mxu0 %v173_v18 }
  0x3a   :  { %1190 = vmatpush3.msra.mxu1 %v156_v19  ;;  %1153 = vmatprep.subr.mxu0 %v172_v20 }
  0x3b   :  { %1191 = vmatprep.subr.mxu1 %v155_v21  ;;  %1154 = vmatpush3.msra.mxu0 %v172_v20 }
  0x3c   :  { %1192 = vmatpush3.msra.mxu1 %v155_v21  ;;  %1155 = vmatprep.subr.mxu0 %v171_v23 }
  0x3d   :  { %1193 = vmatprep.subr.mxu1 %v154_v24  ;;  %1156 = vmatpush3.msra.mxu0 %v171_v23 }
  0x3e   :  { %1194 = vmatpush3.msra.mxu1 %v154_v24  ;;  %1157 = vmatprep.subr.mxu0 %v170_v25 }
  0x3f   :  { %1195 = vmatprep.subr.mxu1 %v153_v26  ;;  %1158 = vmatpush3.msra.mxu0 %v170_v25 }
  0x40   :  { %1196 = vmatpush3.msra.mxu1 %v153_v26  ;;  %1159 = vmatprep.subr.mxu0 %v169_v30 }
  0x41   :  { %1197 = vmatprep.subr.mxu1 %v152_v31  ;;  %1160 = vmatpush3.msra.mxu0 %v169_v30 }
  0x42   :  { %1198 = vmatpush3.msra.mxu1 %v152_v31  ;;  %1161 = vmatprep.subr.mxu0 %v168_v34 }
  0x43   :  { %1199 = vmatprep.subr.mxu1 %v151_v35  ;;  %1162 = vmatpush3.msra.mxu0 %v168_v34 }
  0x44   :  { %1200 = vmatpush3.msra.mxu1 %v151_v35  ;;  %1163 = vmatprep.subr.mxu0 %v167_v41 }
  0x45   :  { %1201 = vmatprep.subr.mxu1 %v150_v42  ;;  %1164 = vmatpush3.msra.mxu0 %v167_v41 }
  0x46   :  { %1165 = vmatprep.mubr.f32.mxu0 %v1529_v28  ;;  %1202 = vmatpush3.msra.mxu1 %v150_v42 }
  0x47   :  { %1203 = vmatprep.mubr.msk.f32.mxu1 %vm1546_vm1, %v133_v45  ;;  %1166 = vmatmul.mubr.f32.vlgmr.msra.gmra.mxu0 %v1533_v32 }
  0x48   :  { %1204 = vmatmul.mubr.f32.vlgmr.msra.gmra.mxu1 %v132_v47  ;;  %1209 = vmatprep.subr.mxu0 %v394_v48 }
  0x49   :  { %1168 = vmatprep.mubr.f32.mxu0 %v1539_v39  ;;  %1210 = vmatpush3.msra.mxu0 %v394_v48 }
  0x4a   :  { %1206 = vmatprep.mubr.msk.f32.mxu1 %vm1557_vm2, %v131_v49  ;;  %1211 = vmatprep.subr.mxu0 %v393_v53 }
  0x4b   :  { %1212 = vmatpush3.msra.mxu0 %v393_v53 }
  0x4c   :  { %1207 = vmatmul.mubr.f32.gmra.mxu1 %v130_v54  ;;  %1213 = vmatprep.subr.mxu0 %v392_v55 }
  0x4d   :  { %1169 = vmatmul.mubr.f32.gmra.mxu0 %v1531_v29 }
  0x4e   :  { %1214 = vmatpush3.msra.mxu0 %v392_v55  ;;  %1241 = vmatprep.mubr.f32.mxu0 %v360_v56 }
  0x4f   :  { %1215 = vmatprep.subr.mxu0 %v391_v57 }
  0x50   :  { %1216 = vmatpush3.msra.mxu0 %v391_v57 }
  0x51   :  { %1217 = vmatprep.subr.mxu0 %v390_v58 }
  0x52   :  { %1218 = vmatpush3.msra.mxu0 %v390_v58 }
  0x53   :  { %1219 = vmatprep.subr.mxu0 %v389_v59 }
  0x54   :  { %1220 = vmatpush3.msra.mxu0 %v389_v59 }
  0x55   :  { %1221 = vmatprep.subr.mxu0 %v388_v60 }
  0x56   :  { %1222 = vmatpush3.msra.mxu0 %v388_v60 }
  0x57   :  { %1223 = vmatprep.subr.mxu0 %v387_v61 }
  0x58   :  { %1224 = vmatpush3.msra.mxu0 %v387_v61 }
  0x59   :  { %1225 = vmatprep.subr.mxu0 %v386_v62 }
  0x5a   :  { %1226 = vmatpush3.msra.mxu0 %v386_v62 }
  0x5b   :  { %1227 = vmatprep.subr.mxu0 %v385_v63 }
  0x5c   :  { %1228 = vmatpush3.msra.mxu0 %v385_v63 }
  0x5d   :  { %1229 = vmatprep.subr.mxu0 %v384_v0 }
  0x5e   :  { %1230 = vmatpush3.msra.mxu0 %v384_v0 }
  0x5f   :  { %1231 = vmatprep.subr.mxu0 %v383_v1 }
  0x60   :  { %1232 = vmatpush3.msra.mxu0 %v383_v1 }
  0x61   :  { %1233 = vmatprep.subr.mxu0 %v382_v2 }
  0x62   :  { %1234 = vmatpush3.msra.mxu0 %v382_v2 }
  0x63   :  { %1235 = vmatprep.subr.mxu0 %v381_v4 }
  0x64   :  { %1236 = vmatpush3.msra.mxu0 %v381_v4 }
  0x65   :  { %1237 = vmatprep.subr.mxu0 %v380_v6 }
  0x66   :  { %1238 = vmatpush3.msra.mxu0 %v380_v6 }
  0x67   :  { %1239 = vmatprep.subr.mxu0 %v379_v10 }
  0x68   :  { %1240 = vmatpush3.msra.mxu0 %v379_v10  ;;  %v609_v10 = vld [vmem:[#allocation7 + $0xf8] sm:$0xff] }
  0x69   :  { %1242 = vmatmul.mubr.msk.f32.vlgmr.msra.gmra.mxu0 %vm1581_vm4, %v359_v11  ;;  %1247 = vmatprep.subr.mxu1 %v609_v10  ;;  %v608_v11 = vld [vmem:[#allocation7 + $0xf0] sm:$0xff] }
  0x6a   :  { %1244 = vmatprep.mubr.f32.mxu0 %v358_v14  ;;  %1248 = vmatpush3.msra.mxu1 %v609_v10  ;;  %v592_v14 = vld [vmem:[#allocation7 + $0x78] sm:$0xff] }
  0x6b   :  { %1249 = vmatprep.subr.mxu1 %v608_v11  ;;  %1285 = vmatprep.subr.mxu0 %v592_v14 }
  0x6c   :  { %1250 = vmatpush3.msra.mxu1 %v608_v11  ;;  %1286 = vmatpush3.msra.mxu0 %v592_v14 }
  0x6d   :  { %1245 = vmatmul.mubr.msk.f32.gmra.mxu0 %vm1593_vm5, %v361_v15  ;;  %1251 = vmatprep.subr.mxu1 %v607_v13 }
  0x6e   :  { %1252 = vmatpush3.msra.mxu1 %v607_v13 }
 0x107   :  { %v1167_v17 = vpop.f32.mrf.mxu0 }
 0x108   :  { %v1205_v18 = vpop.f32.mrf.mxu1 }
 0x109   :  { %v249_v19 = vpop.f32.mrf.mxu0  ;;  %v340_v25 = vadd.f32 %v1205_v18, %v1167_v17  ;;  %v606_v18 = vld [vmem:[#allocation7 + $0xe0] sm:$0xff] }
 0x10a   :  { %v334_v21 = vpop.f32.mrf.mxu1  ;;  %1253 = vmatprep.subr.mxu1 %v606_v18 }
 0x10b   :  { %v335_v26 = vadd.f32 %v334_v21, %v249_v19  ;;  %v591_v19 = vld [vmem:[#allocation7 + $0x70] sm:$0xff]  ;;  %v590_v21 = vld [vmem:[#allocation7 + $0x68] sm:$0xff]  ;;  %1254 = vmatpush3.msra.mxu1 %v606_v18 }
 0x10c   :  { %v1208_v22 = vpop.f32.mrf.mxu1  ;;  %1287 = vmatprep.subr.mxu0 %v591_v19 }
 0x10d   :  { %v1170_v20 = vpop.f32.mrf.mxu0  ;;  %1288 = vmatpush3.msra.mxu0 %v591_v19 }
 0x10e   :  { %v344_v30 = vpop.f32.mrf.mxu1  ;;  %v350_v36 = vadd.f32 %v1208_v22, %v1170_v20  ;;  %v605_v20 = vld [vmem:[#allocation7 + $0xd8] sm:$0xff]  ;;  %v604_v22 = vld [vmem:[#allocation7 + $0xd0] sm:$0xff]  ;;  %1289 = vmatprep.subr.mxu0 %v590_v21 }
 0x10f   :  { %v259_v23 = vpop.f32.mrf.mxu0  ;;  %1255 = vmatprep.subr.mxu1 %v605_v20  ;;  %1290 = vmatpush3.msra.mxu0 %v590_v21 }
 0x110   :  { %v345_v37 = vadd.f32 %v344_v30, %v259_v23  ;;  %1256 = vmatpush3.msra.mxu1 %v605_v20  ;;  %v588_v30 = vld [vmem:[#allocation7 + $0x58] sm:$0xff] }
 0x111   :  { %1257 = vmatprep.subr.mxu1 %v604_v22 }
 0x112   :  { %1258 = vmatpush3.msra.mxu1 %v604_v22 }
 0x129   :  { %v1243_v24 = vpop.f32.mrf.mxu0 }
 0x12a   :  { %v1599_v33 = vadd.f32 %v1243_v24, %v340_v25  ;;  %v589_v24 = vld [vmem:[#allocation7 + $0x60] sm:$0xff] }
 0x12b   :  { %v461_v31 = vpop.f32.mrf.mxu0  ;;  %1291 = vmatprep.subr.mxu0 %v589_v24 }
 0x12c   :  { %v1601_v34 = vadd.f32 %v461_v31, %v335_v26  ;;  %v508_v41 = vmul.f32 %v1599_v33, %v1599_v33  ;;  %v603_v26 = vld [vmem:[#allocation7 + $0xc8] sm:$0xff]  ;;  %1292 = vmatpush3.msra.mxu0 %v589_v24  ;;  %v602_v31 = vld [vmem:[#allocation7 + $0xc0] sm:$0xff] }
 0x12d   :  { %v1246_v35 = vpop.f32.mrf.mxu0  ;;  %1259 = vmatprep.subr.mxu1 %v603_v26  ;;  %1293 = vmatprep.subr.mxu0 %v588_v30 }
 0x12e   :  { %v507_v38 = vmul.f32 %v1601_v34, %v1601_v34  ;;  %v486_v42 = vadd.f32 %v1599_v33, %v1601_v34  ;;  %v1609_v43 = vadd.f32 %v1246_v35, %v350_v36  ;;  %v587_v35 = vld [vmem:[#allocation7 + $0x50] sm:$0xff]  ;;  %1260 = vmatpush3.msra.mxu1 %v603_v26  ;;  %1294 = vmatpush3.msra.mxu0 %v588_v30  ;;  %v601_v36 = vld [vmem:[#allocation7 + $0xb8] sm:$0xff] }
 0x12f   :  { %v471_v40 = vpop.f32.mrf.mxu0  ;;  %1261 = vmatprep.subr.mxu1 %v602_v31  ;;  %1295 = vmatprep.subr.mxu0 %v587_v35 }
 0x130   :  { %v1611_v44 = vadd.f32 %v471_v40, %v345_v37  ;;  %v511_v45 = vadd.f32 %v508_v41, %v507_v38  ;;  %v510_v49 = vmul.f32 %v1609_v43, %v1609_v43  ;;  %v586_v37 = vld [vmem:[#allocation7 + $0x48] sm:$0xff]  ;;  %1262 = vmatpush3.msra.mxu1 %v602_v31  ;;  %1296 = vmatpush3.msra.mxu0 %v587_v35  ;;  %v600_v38 = vld [vmem:[#allocation7 + $0xb0] sm:$0xff]  ;;  %v585_v40 = vld [vmem:[#allocation7 + $0x40] sm:$0xff] }
 0x131   :  { %1263 = vmatprep.subr.mxu1 %v601_v36  ;;  %1297 = vmatprep.subr.mxu0 %v586_v37  ;;  %v599_v41 = vld [vmem:[#allocation7 + $0xa8] sm:$0xff] }
 0x132   :  { %v487_v47 = vadd.f32 %v486_v42, %v1611_v44  ;;  %v509_v48 = vmul.f32 %v1611_v44, %v1611_v44  ;;  %1264 = vmatpush3.msra.mxu1 %v601_v36  ;;  %1298 = vmatpush3.msra.mxu0 %v586_v37  ;;  %v584_v42 = vld [vmem:[#allocation7 + $0x38] sm:$0xff]  ;;  %v806_v37 = vld [vmem:[#allocation7 + $0x168] sm:$0xff] }
 0x133   :  { %1265 = vmatprep.subr.mxu1 %v600_v38  ;;  %1299 = vmatprep.subr.mxu0 %v585_v40 }
 0x134   :  { %v488_v51 = vadd.f32 %v487_v47, %v1609_v43  ;;  %v512_v52 = vadd.f32 %v511_v45, %v509_v48  ;;  %1266 = vmatpush3.msra.mxu1 %v600_v38  ;;  %1300 = vmatpush3.msra.mxu0 %v585_v40  ;;  %v598_v45 = vld [vmem:[#allocation7 + $0xa0] sm:$0xff]  ;;  %v583_v47 = vld [vmem:[#allocation7 + $0x30] sm:$0xff]  ;;  %v597_v48 = vld [vmem:[#allocation7 + $0x98] sm:$0xff] }
 0x135   :  { %1267 = vmatprep.subr.mxu1 %v599_v41  ;;  %1301 = vmatprep.subr.mxu0 %v584_v42 }
 0x136   :  { %v489_v53 = vrot.slane %v488_v51, 4  ;;  %v513_v54 = vadd.f32 %v512_v52, %v510_v49  ;;  %1268 = vmatpush3.msra.mxu1 %v599_v41  ;;  %1302 = vmatpush3.msra.mxu0 %v584_v42  ;;  %v582_v49 = vld [vmem:[#allocation7 + $0x28] sm:$0xff]  ;;  %v581_v52 = vld [vmem:[#allocation7 + $0x20] sm:$0xff] }
 0x137   :  { %1269 = vmatprep.subr.mxu1 %v598_v45  ;;  %1303 = vmatprep.subr.mxu0 %v583_v47  ;;  %v805_v41 = vld [vmem:[#allocation7 + $0x160] sm:$0xff] }
 0x138   :  { %v490_v55 = vadd.f32 %v489_v53, %v488_v51  ;;  %v514_v56 = vrot.slane %v513_v54, 4  ;;  %1270 = vmatpush3.msra.mxu1 %v598_v45  ;;  %1304 = vmatpush3.msra.mxu0 %v583_v47  ;;  %v596_v51 = vld [vmem:[#allocation7 + $0x90] sm:$0xff]  ;;  %v595_v53 = vld [vmem:[#allocation7 + $0x88] sm:$0xff]  ;;  %v804_v47 = vld [vmem:[#allocation7 + $0x158] sm:$0xff] }
 0x139   :  { %1271 = vmatprep.subr.mxu1 %v597_v48  ;;  %1305 = vmatprep.subr.mxu0 %v582_v49 }
 0x13a   :  { %v491_v57 = vrot.slane %v490_v55, 2  ;;  %v515_v58 = vadd.f32 %v514_v56, %v513_v54  ;;  %1272 = vmatpush3.msra.mxu1 %v597_v48  ;;  %1306 = vmatpush3.msra.mxu0 %v582_v49  ;;  %v580_v54 = vld [vmem:[#allocation7 + $0x18] sm:$0xff]  ;;  %v579_v56 = vld [vmem:[#allocation7 + $0x10] sm:$0xff]  ;;  %v802_v49 = vld [vmem:[#allocation7 + $0x148] sm:$0xff] }
 0x13b   :  { %1273 = vmatprep.subr.mxu1 %v596_v51  ;;  %1307 = vmatprep.subr.mxu0 %v581_v52  ;;  %v803_v48 = vld [vmem:[#allocation7 + $0x150] sm:$0xff] }
 0x13c   :  { %v492_v59 = vadd.f32 %v491_v57, %v490_v55  ;;  %v516_v60 = vrot.slane %v515_v58, 2  ;;  %1274 = vmatpush3.msra.mxu1 %v596_v51  ;;  %1308 = vmatpush3.msra.mxu0 %v581_v52  ;;  %v594_v55 = vld [vmem:[#allocation7 + $0x80] sm:$0xff]  ;;  %v578_v57 = vld [vmem:[#allocation7 + $0x8] sm:$0xff]  ;;  %v800_v51 = vld [vmem:[#allocation7 + $0x138] sm:$0xff] }
 0x13d   :  { %1275 = vmatprep.subr.mxu1 %v595_v53  ;;  %1309 = vmatprep.subr.mxu0 %v580_v54  ;;  %v799_v52 = vld [vmem:[#allocation7 + $0x130] sm:$0xff] }
 0x13e   :  { %v493_v61 = vrot.slane %v492_v59, 1  ;;  %v517_v62 = vadd.f32 %v516_v60, %v515_v58  ;;  %1276 = vmatpush3.msra.mxu1 %v595_v53  ;;  %1310 = vmatpush3.msra.mxu0 %v580_v54  ;;  %v808_v58 = vld [vmem:[#allocation7 + $0x178] sm:$0xff]  ;;  %v798_v53 = vld [vmem:[#allocation7 + $0x128] sm:$0xff]  ;;  %v797_v54 = vld [vmem:[#allocation7 + $0x120] sm:$0xff] }
 0x13f   :  { %1277 = vmatprep.subr.mxu1 %v594_v55  ;;  %1311 = vmatprep.subr.mxu0 %v579_v56 }
 0x140   :  { %v494_v63 = vadd.f32 %v493_v61, %v492_v59  ;;  %v518_v0 = vrot.slane %v517_v62, 1  ;;  %1278 = vmatpush3.msra.mxu1 %v594_v55  ;;  %1312 = vmatpush3.msra.mxu0 %v579_v56  ;;  %v577_v59 = vld [vmem:[#allocation7] sm:$0xff]  ;;  %v796_v55 = vld [vmem:[#allocation7 + $0x118] sm:$0xff]  ;;  %v795_v56 = vld [vmem:[#allocation7 + $0x110] sm:$0xff] }
 0x141   :  { %1313 = vmatprep.subr.mxu0 %v578_v57  ;;  %1323 = vmatprep.subr.mxu1 %v808_v58 }
 0x142   :  { %495 = vrot.lane.b32.xlu0 %v494_v63, %s1463_s30  ;;  %v519_v1 = vadd.f32 %v518_v0, %v517_v62  ;;  %1314 = vmatpush3.msra.mxu0 %v578_v57  ;;  %v794_v57 = vld [vmem:[#allocation7 + $0x108] sm:$0xff] }
 0x143   :  { %1315 = vmatprep.subr.mxu0 %v577_v59 }
 0x144   :  { %1316 = vmatpush3.msra.mxu0 %v577_v59  ;;  %v793_v59 = vld [vmem:[#allocation7 + $0x100] sm:$0xff] }
 0x146   :  { %520 = vrot.lane.b32.xlu0 %v519_v1, %s1463_s30 }
 0x1b4   :  { %v496_v2 = vpop.permute.xlu0 %495 }
 0x1b5   :  { %v497_v3 = vadd.f32 %v496_v2, %v494_v63 }
 0x1b7   :  { %498 = vrot.lane.b32.xlu1 %v497_v3, %s1465_s0 }
 0x1b8   :  { %v521_v4 = vpop.permute.xlu0 %520 }
 0x1b9   :  { %v522_v5 = vadd.f32 %v521_v4, %v519_v1 }
 0x1bb   :  { %523 = vrot.lane.b32.xlu1 %v522_v5, %s1465_s0 }
 0x229   :  { %v499_v6 = vpop.permute.xlu1 %498 }
 0x22a   :  { %v500_v7 = vadd.f32 %v499_v6, %v497_v3  ;;  %v1639_v6 = vsub.s32 0, %v1527_v27 }
 0x22c   :  { %501 = vrot.lane.b32.xlu0 %v500_v7, %s1466_s2 }
 0x22d   :  { %v524_v8 = vpop.permute.xlu1 %523 }
 0x22e   :  { %v525_v9 = vadd.f32 %v524_v8, %v522_v5  ;;  %v484_v5 = vld [vmem:[%s1735_s3] sm:$0x1] }
 0x230   :  { %526 = vrot.lane.b32.xlu1 %v525_v9, %s1466_s2 }
 0x29e   :  { %v502_v15 = vpop.permute.xlu0 %501 }
 0x29f   :  { %v1625_v17 = vadd.f32 %v502_v15, %v500_v7 }
 0x2a1   :  { %504 = vrot.lane.b32.xlu0 %v1625_v17, %s1467_s17 }
 0x2a2   :  { %v527_v23 = vpop.permute.xlu1 %526 }
 0x2a3   :  { %v1629_v25 = vadd.f32 %v527_v23, %v525_v9  ;;  %v485_v9 = vld [vmem:[%s1736_s4] sm:$0x1] }
 0x2a5   :  { %529 = vrot.lane.b32.xlu1 %v1629_v25, %s1467_s17 }
 0x313   :  { %v505_v60 = vpop.permute.xlu0 %504 }
 0x314   :  { %v506_v61 = vadd.f32 %v505_v60, %v1625_v17 }
 0x316   :  { %v532_v62 = vmul.f32 0.001953125, %v506_v61 }
 0x317   :  { %v530_v63 = vpop.permute.xlu1 %529 }
 0x318   :  { %v531_v0 = vadd.f32 %v530_v63, %v1629_v25  ;;  %v534_v1 = vmul.f32 %v532_v62, %v532_v62 }
 0x31a   :  { %v533_v2 = vmul.f32 0.001953125, %v531_v0 }
 0x31c   :  { %v535_v3 = vsub.f32 %v533_v2, %v534_v1 }
 0x31e   :  { %v536_v4 = vadd.f32 1e-05, %v535_v3 }
 0x320   :  { %1370 = vrsqrt.f32 %v536_v4 }
 0x32d   :  { %v1371_v7 = vpop.eup %1370 }
 0x32e   :  { %v538_v8 = vmul.f32 %v1371_v7, %v484_v5 }
 0x330   :  { %v539_v10 = vmul.f32 %v538_v8, %v532_v62  ;;  %v545_v11 = vrot.slane %v538_v8, %v1639_v6 }
 0x332   :  { %v540_v13 = vsub.f32 %v485_v9, %v539_v10  ;;  %v547_v14 = vmul.f32 %v545_v11, %v1601_v34  ;;  %v548_v17 = vmul.f32 %v545_v11, %v1599_v33  ;;  %v549_v18 = vmul.f32 %v545_v11, %v1611_v44  ;;  %v807_v34 = vld [vmem:[#allocation7 + $0x170] sm:$0xff] }
 0x333   :  { %v550_v19 = vmul.f32 %v545_v11, %v1609_v43 }
 0x334   :  { %v555_v15 = vrot.slane %v540_v13, %v1639_v6 }
 0x336   :  { %v557_v20 = vadd.f32 %v555_v15, %v547_v14  ;;  %v558_v21 = vadd.f32 %v555_v15, %v548_v17  ;;  %v559_v22 = vadd.f32 %v555_v15, %v549_v18  ;;  %v560_v23 = vadd.f32 %v555_v15, %v550_v19 }
 0x338   :  { %v1650_v24 = vmax.f32 %v557_v20, 0.0  ;;  %v1652_v25 = vmax.f32 %v558_v21, 0.0  ;;  %v1654_v26 = vmax.f32 %v559_v22, 0.0  ;;  %v1656_v30 = vmax.f32 %v560_v23, 0.0 }
 0x33a   :  { %1279 = vmatprep.mubr.f32.mxu1 %v1650_v24  ;;  %v565_v33 = vrot.slane %v1650_v24, 7  ;;  %v568_v44 = vrot.slane %v1656_v30, 7  ;;  %v566_v43 = vrot.slane %v1652_v25, 7  ;;  %v567_v31 = vrot.slane %v1654_v26, 7 }
 0x33b   :  { %1280 = vmatmul.mubr.f32.vlgmr.msra.gmra.mxu1 %v1652_v25  ;;  %v780_v38 = vrot.slane %v1650_v24, 1  ;;  %v781_v40 = vrot.slane %v1652_v25, 1  ;;  %v783_v60 = vrot.slane %v1656_v30, 1 }
 0x33c   :  { %1324 = vmatpush3.msra.mxu1 %v808_v58  ;;  %1282 = vmatprep.mubr.f32.mxu1 %v1654_v26  ;;  %v572_v35 = vsel %vm129_vm0, %v568_v44, %v565_v33  ;;  %v571_v36 = vsel %vm129_vm0, %v565_v33, %v566_v43  ;;  %v570_v42 = vsel %vm129_vm0, %v566_v43, %v567_v31  ;;  %v782_v58 = vrot.slane %v1654_v26, 1 }
 0x33d   :  { %1325 = vmatprep.subr.mxu1 %v807_v34  ;;  %1317 = vmatprep.mubr.msk.f32.mxu0 %vm1546_vm1, %v572_v35  ;;  %v786_v45 = vsel %vm357_vm3, %v780_v38, %v781_v40  ;;  %v569_v46 = vsel %vm129_vm0, %v567_v31, %v568_v44  ;;  %v787_v63 = vsel %vm357_vm3, %v783_v60, %v780_v38 }
 0x33e   :  { %1326 = vmatpush3.msra.mxu1 %v807_v34  ;;  %1318 = vmatmul.mubr.f32.vlgmr.msra.gmra.mxu0 %v571_v36  ;;  %v785_v61 = vsel %vm357_vm3, %v781_v40, %v782_v58  ;;  %v784_v62 = vsel %vm357_vm3, %v782_v58, %v783_v60 }
 0x33f   :  { %1327 = vmatprep.subr.mxu1 %v806_v37  ;;  %1283 = vmatmul.mubr.f32.gmra.mxu1 %v1656_v30 }
 0x340   :  { %1320 = vmatprep.mubr.msk.f32.mxu0 %vm1557_vm2, %v570_v42  ;;  %1328 = vmatpush3.msra.mxu1 %v806_v37 }
 0x341   :  { %1329 = vmatprep.subr.mxu1 %v805_v41  ;;  %1355 = vmatprep.mubr.f32.mxu1 %v786_v45 }
 0x342   :  { %1330 = vmatpush3.msra.mxu1 %v805_v41  ;;  %1321 = vmatmul.mubr.f32.gmra.mxu0 %v569_v46 }
 0x343   :  { %1331 = vmatprep.subr.mxu1 %v804_v47 }
 0x344   :  { %1332 = vmatpush3.msra.mxu1 %v804_v47 }
 0x345   :  { %1333 = vmatprep.subr.mxu1 %v803_v48 }
 0x346   :  { %1334 = vmatpush3.msra.mxu1 %v803_v48 }
 0x347   :  { %1335 = vmatprep.subr.mxu1 %v802_v49 }
 0x348   :  { %1336 = vmatpush3.msra.mxu1 %v802_v49 }
 0x349   :  { %1337 = vmatprep.subr.mxu1 %v801_v50 }
 0x34a   :  { %1338 = vmatpush3.msra.mxu1 %v801_v50 }
 0x34b   :  { %1339 = vmatprep.subr.mxu1 %v800_v51 }
 0x34c   :  { %1340 = vmatpush3.msra.mxu1 %v800_v51 }
 0x34d   :  { %1341 = vmatprep.subr.mxu1 %v799_v52 }
 0x34e   :  { %1342 = vmatpush3.msra.mxu1 %v799_v52 }
 0x34f   :  { %1343 = vmatprep.subr.mxu1 %v798_v53 }
 0x350   :  { %1344 = vmatpush3.msra.mxu1 %v798_v53 }
 0x351   :  { %1345 = vmatprep.subr.mxu1 %v797_v54 }
 0x352   :  { %1346 = vmatpush3.msra.mxu1 %v797_v54 }
 0x353   :  { %1347 = vmatprep.subr.mxu1 %v796_v55 }
 0x354   :  { %1348 = vmatpush3.msra.mxu1 %v796_v55 }
 0x355   :  { %1349 = vmatprep.subr.mxu1 %v795_v56 }
 0x356   :  { %1350 = vmatpush3.msra.mxu1 %v795_v56 }
 0x357   :  { %1351 = vmatprep.subr.mxu1 %v794_v57 }
 0x358   :  { %1352 = vmatpush3.msra.mxu1 %v794_v57 }
 0x359   :  { %1353 = vmatprep.subr.mxu1 %v793_v59 }
 0x35a   :  { %1354 = vmatpush3.msra.mxu1 %v793_v59 }
 0x35b   :  { %1356 = vmatmul.mubr.msk.f32.vlgmr.msra.gmra.mxu1 %vm1581_vm4, %v785_v61 }
 0x35c   :  { %1358 = vmatprep.mubr.f32.mxu1 %v784_v62 }
 0x35f   :  { %1359 = vmatmul.mubr.msk.f32.gmra.mxu1 %vm1593_vm5, %v787_v63 }
 0x3fb   :  { %v1281_v0 = vpop.f32.mrf.mxu1 }
 0x3fd   :  { %v676_v1 = vpop.f32.mrf.mxu1 }
 0x3fe   :  { %v1319_v2 = vpop.f32.mrf.mxu0 }
 0x3ff   :  { %v1284_v3 = vpop.f32.mrf.mxu1  ;;  %v767_v12 = vadd.f32 %v1319_v2, %v1281_v0 }
 0x400   :  { %v761_v4 = vpop.f32.mrf.mxu0 }
 0x401   :  { %v686_v5 = vpop.f32.mrf.mxu1  ;;  %v762_v9 = vadd.f32 %v761_v4, %v676_v1  ;;  %v898_v4 = vld [vmem:[%s1737_s5] sm:$0x1]  ;;  %s1468_s5 = smov [#allocation8]  }
 0x402   :  { %v1322_v7 = vpop.f32.mrf.mxu0  ;;  %s992_s24 = sshll.u32 %s1468_s5, 4  ;;  %s993_s24 = int_to_ptr.vmem [resolvable:$true] %s992_s24 }
 0x403   :  { %v777_v15 = vadd.f32 %v1322_v7, %v1284_v3  ;;  %p1439_p2 = scmp.lt.s32.totalorder %s993_s24, %s993_s24 }
 0x404   :  { %v771_v10 = vpop.f32.mrf.mxu0 }
 0x405   :  { %v772_v16 = vadd.f32 %v771_v10, %v686_v5 }
 0x41b   :  { %v1357_v8 = vpop.f32.mrf.mxu1 }
 0x41c   :  { %v1694_v13 = vadd.f32 %v1357_v8, %v767_v12  ;;  %v899_v8 = vld [vmem:[%s1738_s6] sm:$0x1]  ;;  %s1434_s6 = scalar_lea.vmem %s993_s24, 512 }
 0x41d   :  { %v875_v11 = vpop.f32.mrf.mxu1  ;;  %p1435_p1 = scmp.ne.s32.totalorder %s993_s24, %s1434_s6  ;;  %p1440_p3 = scmp.lt.s32.totalorder %s1434_s6, %s1434_s6 }
 0x41e   :  { %v1696_v14 = vadd.f32 %v875_v11, %v762_v9  ;;  %v922_v19 = vmul.f32 %v1694_v13, %v1694_v13 }
 0x41f   :  { %v1360_v27 = vpop.f32.mrf.mxu1  ;;  %p1441_p4 = por %p1440_p3, %p1439_p2 }
 0x420   :  { %v921_v17 = vmul.f32 %v1696_v14, %v1696_v14  ;;  %v900_v20 = vadd.f32 %v1694_v13, %v1696_v14  ;;  %v897_v21 = vadd.f32 %v1360_v27, %v777_v15 }
 0x421   :  { %v885_v18 = vpop.f32.mrf.mxu1  ;;  %p1442_p5 = pnand %p1441_p4, %p1435_p1 }
 0x422   :  { %v896_v22 = vadd.f32 %v885_v18, %v772_v16  ;;  %v925_v23 = vadd.f32 %v922_v19, %v921_v17  ;;  %v924_v26 = vmul.f32 %v897_v21, %v897_v21 }
 0x424   :  { %v901_v24 = vadd.f32 %v900_v20, %v896_v22  ;;  %v923_v25 = vmul.f32 %v896_v22, %v896_v22 }
 0x426   :  { %v902_v30 = vadd.f32 %v901_v24, %v897_v21  ;;  %v926_v34 = vadd.f32 %v925_v23, %v923_v25 }
 0x428   :  { %v903_v33 = vrot.slane %v902_v30, 4  ;;  %v927_v44 = vadd.f32 %v926_v34, %v924_v26 }
 0x42a   :  { %v904_v43 = vadd.f32 %v903_v33, %v902_v30  ;;  %v928_v31 = vrot.slane %v927_v44, 4 }
 0x42c   :  { %v905_v35 = vrot.slane %v904_v43, 2  ;;  %v929_v36 = vadd.f32 %v928_v31, %v927_v44 }
 0x42e   :  { %v906_v37 = vadd.f32 %v905_v35, %v904_v43  ;;  %v930_v38 = vrot.slane %v929_v36, 2 }
 0x430   :  { %v907_v40 = vrot.slane %v906_v37, 1  ;;  %v931_v41 = vadd.f32 %v930_v38, %v929_v36 }
 0x432   :  { %v908_v42 = vadd.f32 %v907_v40, %v906_v37  ;;  %v932_v45 = vrot.slane %v931_v41, 1 }
 0x434   :  { %909 = vrot.lane.b32.xlu0 %v908_v42, %s1463_s30  ;;  %v933_v47 = vadd.f32 %v932_v45, %v931_v41 }
 0x436   :  { %934 = vrot.lane.b32.xlu1 %v933_v47, %s1463_s30 }
 0x4a6   :  { %v910_v46 = vpop.permute.xlu0 %909 }
 0x4a7   :  { %v911_v48 = vadd.f32 %v910_v46, %v908_v42 }
 0x4a8   :  { %v935_v49 = vpop.permute.xlu1 %934 }
 0x4a9   :  { %v936_v50 = vadd.f32 %v935_v49, %v933_v47  ;;  %912 = vrot.lane.b32.xlu0 %v911_v48, %s1465_s0 }
 0x4ab   :  { %937 = vrot.lane.b32.xlu1 %v936_v50, %s1465_s0 }
 0x51b   :  { %v913_v51 = vpop.permute.xlu0 %912 }
 0x51c   :  { %v914_v52 = vadd.f32 %v913_v51, %v911_v48 }
 0x51d   :  { %v938_v53 = vpop.permute.xlu1 %937 }
 0x51e   :  { %v939_v54 = vadd.f32 %v938_v53, %v936_v50  ;;  %915 = vrot.lane.b32.xlu0 %v914_v52, %s1466_s2 }
 0x520   :  { %940 = vrot.lane.b32.xlu1 %v939_v54, %s1466_s2 }
 0x590   :  { %v916_v55 = vpop.permute.xlu0 %915 }
 0x591   :  { %v917_v56 = vadd.f32 %v916_v55, %v914_v52 }
 0x592   :  { %v941_v57 = vpop.permute.xlu1 %940 }
 0x593   :  { %v942_v58 = vadd.f32 %v941_v57, %v939_v54  ;;  %918 = vrot.lane.b32.xlu0 %v917_v56, %s1467_s17 }
 0x595   :  { %943 = vrot.lane.b32.xlu1 %v942_v58, %s1467_s17 }
 0x605   :  { %v919_v59 = vpop.permute.xlu0 %918 }
 0x606   :  { %v920_v60 = vadd.f32 %v919_v59, %v917_v56 }
 0x607   :  { %v944_v61 = vpop.permute.xlu1 %943 }
 0x608   :  { %v946_v62 = vmul.f32 0.001953125, %v920_v60  ;;  %v945_v63 = vadd.f32 %v944_v61, %v942_v58 }
 0x60a   :  { %v948_v0 = vmul.f32 %v946_v62, %v946_v62  ;;  %v947_v1 = vmul.f32 0.001953125, %v945_v63 }
 0x60c   :  { %v949_v2 = vsub.f32 %v947_v1, %v948_v0 }
 0x60e   :  { %v950_v3 = vadd.f32 1e-05, %v949_v2 }
 0x610   :  { %1372 = vrsqrt.f32 %v950_v3 }
 0x61d   :  { %v1373_v5 = vpop.eup %1372 }
 0x61e   :  { %v952_v7 = vmul.f32 %v1373_v5, %v898_v4 }
 0x620   :  { %v953_v12 = vmul.f32 %v952_v7, %v946_v62  ;;  %v959_v9 = vrot.slane %v952_v7, %v1639_v6 }
 0x622   :  { %v954_v10 = vsub.f32 %v899_v8, %v953_v12  ;;  %v961_v11 = vmul.f32 %v959_v9, %v1696_v14  ;;  %v962_v27 = vmul.f32 %v959_v9, %v1694_v13  ;;  %v963_v15 = vmul.f32 %v959_v9, %v896_v22 }
 0x623   :  { %v964_v16 = vmul.f32 %v959_v9, %v897_v21 }
 0x624   :  { %v969_v17 = vrot.slane %v954_v10, %v1639_v6 }
 0x626   :  { %v971_v18 = vadd.f32 %v969_v17, %v961_v11  ;;  %v972_v19 = vadd.f32 %v969_v17, %v962_v27  ;;  %v973_v20 = vadd.f32 %v969_v17, %v963_v15  ;;  %v974_v23 = vadd.f32 %v969_v17, %v964_v16 }
 0x628   :  { %v975_v24 = vadd.f32 %v971_v18, %v1529_v28  ;;  %v976_v25 = vadd.f32 %v972_v19, %v1533_v32  ;;  %v977_v26 = vadd.f32 %v973_v20, %v1539_v39  ;;  %v978_v14 = vadd.f32 %v974_v23, %v1531_v29 }
 0x62a   :  { %v979_v30 = vmax.f32 %v975_v24, 0.0  ;;  %v980_v13 = vmax.f32 %v976_v25, 0.0  ;;  %v981_v22 = vmax.f32 %v977_v26, 0.0  ;;  %v982_v21 = vmax.f32 %v978_v14, 0.0 }
 0x62c   :  { %983 = vst [vmem:[#allocation8] sm:$0xff] %v979_v30  ;;  %984 = vst [vmem:[#allocation8 + $0x8] sm:$0xff] %v980_v13 }
 0x62d   :  { %985 = vst [vmem:[#allocation8 + $0x10] sm:$0xff] %v981_v22  ;;  %986 = vst [vmem:[#allocation8 + $0x18] sm:$0xff] %v982_v21 }
 0x62e   :  { %1445 = shalt.err (!%p1442_p5)
}
 0x62f   :  { %998 = dma.vmem_to_hbm [thread:$0]  %s993_s24, 512, %s1739_s7, [#allocation4], %s1462_s29, %s1462_s29, %s1463_s30  }
 0x630   :  { %1458 = dma.done.wait [#allocation4], 512  }
 0x631   :  { %1459 = vsyncadd [#allocation4], 4294966784 }
 0x632   :  { %1002 = vsyncpa [#allocation3], 1 }
 0x633   :  { %1003 = vsyncpa [#allocation6], 1 }
 0x634   :  { %1004 = vsyncpa [#allocation4], 1 }

</bundles_post_ra>
